<compile_context>
chip_gen: v5e
topology: v5e:2x2
jax: 0.10.0
libtpu: 0.0.40
codegen_flags: <defaults>
</compile_context>

<pallas_src>
import functools

import jax
import jax.numpy as jnp
from jax.experimental import pallas as pl
from jax.experimental.pallas import tpu as pltpu

EPS = 1e-07
OUT_LANES = 128  # lane-dense partial-sum output


def _round_up(x: int, m: int) -> int:
    return ((x + m - 1) // m) * m


def _vmem_capacity_bytes() -> int:
    """Physical VMEM of the local chip; conservative fallback (v7x) if unknown."""
    try:
        info = pltpu.get_tpu_info()
        cap = getattr(info, "vmem_capacity_bytes", None)
        if cap:
            return int(cap)
    except Exception:
        pass
    return 64 * 1024 * 1024


def _focal_loss_kernel(preds_ref, labels_ref, out_ref, *,
                       n_rows, tile_rows, n_classes, labels_are_indices, gamma):
    i = pl.program_id(0)

    x = preds_ref[...].astype(jnp.float32)                        # (TN, C)

    if labels_are_indices:
        lbl = labels_ref[...]                                     # (TN, 1) int32
        col = jax.lax.broadcasted_iota(jnp.int32, (tile_rows, n_classes), 1)
        y = (col == lbl).astype(jnp.float32)                      # one-hot in VMEM
    else:
        y = labels_ref[...].astype(jnp.float32)                   # (TN, C)

    # numerically-stable softmax over the last (lane) axis
    m = jnp.max(x, axis=-1, keepdims=True)
    e = jnp.exp(x - m)
    denom = jnp.sum(e, axis=-1, keepdims=True)                    # (TN, 1)
    p = e * pl.reciprocal(denom)                                  # per-row recip + vmul

    # ce = -log(p + eps) * labels ; floss = (1 - p)^gamma * ce
    ce = -jnp.log(p + EPS) * y
    q = 1.0 - p
    if gamma == 2.0:
        w = q * q                                                 # VALU, no EUP pow
    elif gamma == 1.0:
        w = q
    else:
        w = jnp.power(q, jnp.float32(gamma))
    row_sum = jnp.sum(w * ce, axis=-1, keepdims=True)             # (TN, 1)

    def write(val):
        out_ref[...] = jnp.full((1, OUT_LANES), val, dtype=jnp.float32)

    if n_rows % tile_rows != 0:
        # Only the last tile has padded (undefined) rows; drop them with a
        # select (NaN-safe) before the reduction, gated off the hot tiles.
        last = pl.num_programs(0) - 1

        @pl.when(i == last)
        def _():
            row_ids = i * tile_rows + jax.lax.broadcasted_iota(
                jnp.int32, (tile_rows, 1), 0)
            write(jnp.sum(jnp.where(row_ids < n_rows, row_sum, 0.0)))

        @pl.when(i != last)
        def _():
            write(jnp.sum(row_sum))
    else:
        write(jnp.sum(row_sum))


def focal_loss(preds: jax.Array, labels: jax.Array, *,
               gamma: float = 2.0, max_tile_rows: int | None = None) -> jax.Array:
    """Pallas TPU implementation of Focal_Loss(gamma).forward(preds, labels).

    preds:  (N, C) float32 or bfloat16 logits (softmax over dim=-1).
    labels: (N, C) dense (soft / one-hot) float labels, matching the PyTorch
            module, OR (N,) / (N, 1) int32 class indices (fast path that
            removes the dense-label HBM stream).
    """
    assert preds.ndim == 2, "preds must be (N, C)"
    N, C = preds.shape

    labels_are_indices = jnp.issubdtype(labels.dtype, jnp.integer)
    if labels_are_indices:
        assert labels.shape in ((N,), (N, 1)), "index labels must be (N,) or (N, 1)"
        labels_arr = labels.reshape(N, 1).astype(jnp.int32)
        labels_row_bytes = 4
    else:
        assert labels.shape == preds.shape, "dense labels must match preds shape"
        labels_arr = labels
        labels_row_bytes = C * labels.dtype.itemsize

    preds_row_bytes = C * preds.dtype.itemsize
    row_bytes = preds_row_bytes + labels_row_bytes

    # ---- generation-aware tile sizing (kernel is HBM-bound) ------------------
    vmem_cap = _vmem_capacity_bytes()
    # Total double-buffered input footprint target: <= ~1/3 physical VMEM,
    # capped at 24 MiB (plenty to hit ~85% of HBM roofline on v5e/v6e/v7x).
    pipeline_budget = min(vmem_cap // 3, 24 * 1024 * 1024)

    min_pipeline = 2 * 8 * row_bytes
    if min_pipeline > vmem_cap * 3 // 4:
        # TODO(synk): add a C-chunked online-softmax variant (second
        # "arbitrary" grid axis over C) for extremely large class counts.
        raise ValueError(f"C={C} too large for single-pass VMEM tiling")

    if N < 8:
        tn = N                                        # full-array block is always legal
    else:
        tn = pipeline_budget // (2 * row_bytes)       # 2 pipeline buffers per input
        tn = max(8, (tn // 8) * 8)
        tn = min(tn, (N // 8) * 8)                    # block never exceeds the array
        # Keep >= ~4 grid steps when there is enough work: megacore sharding on
        # v7x's two TensorCores + an active DMA/compute pipeline everywhere.
        MIN_TILES = 4
        if N >= MIN_TILES * 16:
            tn = min(tn, max(8, _round_up(pl.cdiv(N, MIN_TILES), 8)))
        if max_tile_rows is not None:
            tn = max(8, min(tn, (max_tile_rows // 8) * 8))

    num_tiles = pl.cdiv(N, tn)

    pipeline_bytes = 2 * tn * row_bytes + 4 * OUT_LANES * 4
    vmem_limit_bytes = int(min(vmem_cap * 3 // 4,
                               max(2 * pipeline_bytes, 16 * 1024 * 1024)))

    kernel = functools.partial(
        _focal_loss_kernel,
        n_rows=N, tile_rows=tn, n_classes=C,
        labels_are_indices=bool(labels_are_indices), gamma=float(gamma))

    if labels_are_indices:
        labels_spec = pl.BlockSpec((tn, 1), lambda i: (i, 0))
    else:
        labels_spec = pl.BlockSpec((tn, C), lambda i: (i, 0))

    partials = pl.pallas_call(
        kernel,
        out_shape=jax.ShapeDtypeStruct((num_tiles, OUT_LANES), jnp.float32),
        grid_spec=pltpu.PrefetchScalarGridSpec(
            num_scalar_prefetch=0,
            grid=(num_tiles,),
            in_specs=[
                pl.BlockSpec((tn, C), lambda i: (i, 0)),
                labels_spec,
            ],
            out_specs=pl.BlockSpec((1, OUT_LANES), lambda i: (i, 0)),
        ),
        compiler_params=pltpu.CompilerParams(
            dimension_semantics=("parallel",),
            vmem_limit_bytes=vmem_limit_bytes,
        ),
    )(preds, labels_arr)

    # tiny final reduction over per-tile partial sums, then mean over N
    return jnp.sum(partials[:, 0]) / N


def _reference(preds, labels, gamma=2.0):
    # Pure-JAX reference mirroring the PyTorch module.
    p = jax.nn.softmax(preds.astype(jnp.float32), axis=-1)
    ce = -jnp.log(p + EPS) * labels.astype(jnp.float32)
    floss = jnp.power(1.0 - p, gamma) * ce
    return jnp.mean(jnp.sum(floss, axis=1))


if __name__ == "__main__":
    key = jax.random.PRNGKey(0)
    k1, k2, k3, k4 = jax.random.split(key, 4)

    # --- main check: small shape with dense one-hot f32 labels (module spec) ---
    N, C = 8, 32
    preds = jax.random.normal(k1, (N, C), dtype=jnp.float32)
    label_idx = jax.random.randint(k2, (N,), 0, C)
    labels = jax.nn.one_hot(label_idx, C, dtype=jnp.float32)

    out = focal_loss(preds, labels)
    jax.block_until_ready(out)
    ref = _reference(preds, labels)
    assert jnp.allclose(out, ref, rtol=1e-5, atol=1e-6), (out, ref)

    # --- multi-tile + partial-tail path (forced small tile), soft labels ------
    N2, C2 = 20, 32
    preds2 = jax.random.normal(k3, (N2, C2), dtype=jnp.float32)
    labels2 = jax.random.uniform(k4, (N2, C2), dtype=jnp.float32)
    out2 = focal_loss(preds2, labels2, max_tile_rows=8)
    jax.block_until_ready(out2)
    ref2 = _reference(preds2, labels2)
    assert jnp.allclose(out2, ref2, rtol=1e-5, atol=1e-6), (out2, ref2)

    # --- int32 class-index fast path (removes the dense-label HBM stream) -----
    label_idx2 = jax.random.randint(k2, (N2,), 0, C2)
    out3 = focal_loss(preds2, label_idx2.astype(jnp.int32), max_tile_rows=8)
    jax.block_until_ready(out3)
    ref3 = _reference(preds2, jax.nn.one_hot(label_idx2, C2, dtype=jnp.float32))
    assert jnp.allclose(out3, ref3, rtol=1e-5, atol=1e-6), (out3, ref3)

    # --- bf16 inputs (halved HBM bytes; kernel upcasts to f32 in VMEM) --------
    out4 = focal_loss(preds.astype(jnp.bfloat16), labels.astype(jnp.bfloat16))
    jax.block_until_ready(out4)
    ref4 = _reference(preds.astype(jnp.bfloat16), labels.astype(jnp.bfloat16))
    assert jnp.allclose(out4, ref4, rtol=2e-3, atol=2e-3), (out4, ref4)

    print("KERNEL_OK")
</pallas_src>

<mosaic_0001>
module attributes {stable_mosaic.version = 11 : i64} {
  func.func @_focal_loss_kernel(%arg0: i32, %arg1: memref<8x32xf32, #tpu.memory_space<vmem>>, %arg2: memref<8x32xf32, #tpu.memory_space<vmem>>, %arg3: memref<1x128xf32, #tpu.memory_space<vmem>>) attributes {dimension_semantics = [#tpu.dimension_semantics<parallel>], iteration_bounds = array<i64: 1>, scalar_prefetch = 0 : i64, scratch_operands = 0 : i64, tpu.core_type = #tpu.core_type<tc>, window_params = [{transform_indices = @transform_0, window_bounds = array<i64: 8, 32>}, {transform_indices = @transform_1, window_bounds = array<i64: 8, 32>}, {transform_indices = @transform_2, window_bounds = array<i64: 1, 128>}]} {
    %c0 = arith.constant 0 : index
    %c0_0 = arith.constant 0 : index
    %0 = vector.load %arg1[%c0, %c0_0] : memref<8x32xf32, #tpu.memory_space<vmem>>, vector<8x32xf32>
    %c0_1 = arith.constant 0 : index
    %c0_2 = arith.constant 0 : index
    %1 = vector.load %arg2[%c0_1, %c0_2] : memref<8x32xf32, #tpu.memory_space<vmem>>, vector<8x32xf32>
    %cst = arith.constant dense<0xFF800000> : vector<8xf32>
    %2 = vector.multi_reduction <maximumf>, %0, %cst [1] : vector<8x32xf32> to vector<8xf32>
    %3 = vector.shape_cast %2 : vector<8xf32> to vector<8x1xf32>
    %4 = vector.broadcast %3 : vector<8x1xf32> to vector<8x32xf32>
    %5 = arith.subf %0, %4 : vector<8x32xf32>
    %6 = math.exp %5 : vector<8x32xf32>
    %cst_3 = arith.constant dense<0.000000e+00> : vector<8xf32>
    %7 = vector.multi_reduction <add>, %6, %cst_3 [1] : vector<8x32xf32> to vector<8xf32>
    %8 = vector.shape_cast %7 : vector<8xf32> to vector<8x1xf32>
    %9 = tpu.reciprocal %8 : vector<8x1xf32> -> vector<8x1xf32>
    %10 = vector.broadcast %9 : vector<8x1xf32> to vector<8x32xf32>
    %11 = arith.mulf %6, %10 : vector<8x32xf32>
    %cst_4 = arith.constant 1.000000e-07 : f32
    %12 = vector.broadcast %cst_4 : f32 to vector<8x32xf32>
    %13 = arith.addf %11, %12 : vector<8x32xf32>
    %14 = math.log %13 : vector<8x32xf32>
    %cst_5 = arith.constant 0.000000e+00 : f32
    %15 = vector.broadcast %cst_5 : f32 to vector<8x32xf32>
    %16 = arith.subf %15, %14 : vector<8x32xf32>
    %17 = arith.mulf %16, %1 : vector<8x32xf32>
    %cst_6 = arith.constant 1.000000e+00 : f32
    %18 = vector.broadcast %cst_6 : f32 to vector<8x32xf32>
    %19 = arith.subf %18, %11 : vector<8x32xf32>
    %20 = arith.mulf %19, %19 : vector<8x32xf32>
    %21 = arith.mulf %20, %17 : vector<8x32xf32>
    %cst_7 = arith.constant dense<0.000000e+00> : vector<8xf32>
    %22 = vector.multi_reduction <add>, %21, %cst_7 [1] : vector<8x32xf32> to vector<8xf32>
    %23 = vector.shape_cast %22 : vector<8xf32> to vector<8x1xf32>
    %24 = vector.shape_cast %23 : vector<8x1xf32> to vector<1x8x1xf32>
    %cst_8 = arith.constant dense<0.000000e+00> : vector<1xf32>
    %25 = vector.multi_reduction <add>, %24, %cst_8 [1, 2] : vector<1x8x1xf32> to vector<1xf32>
    %26 = vector.shape_cast %25 : vector<1xf32> to vector<1x1x1xf32>
    %27 = vector.extract %26[0, 0, 0] : f32 from vector<1x1x1xf32>
    %28 = vector.broadcast %27 : f32 to vector<1x128xf32>
    %c0_9 = arith.constant 0 : index
    %c0_10 = arith.constant 0 : index
    %29 = vector.load %arg3[%c0_9, %c0_10] : memref<1x128xf32, #tpu.memory_space<vmem>>, vector<1x128xf32>
    tpu.vector_store %arg3[%c0_9, %c0_10], %28 {strides = array<i32>} : memref<1x128xf32, #tpu.memory_space<vmem>>, vector<1x128xf32>,
    return
  }
  func.func @transform_0(%arg0: i32) -> (i32, i32) {
    %c0_i32 = arith.constant 0 : i32
    %c0_i32_0 = arith.constant 0 : i32
    return %arg0, %c0_i32 : i32, i32
  }
  func.func @transform_1(%arg0: i32) -> (i32, i32) {
    %c0_i32 = arith.constant 0 : i32
    %c0_i32_0 = arith.constant 0 : i32
    return %arg0, %c0_i32 : i32, i32
  }
  func.func @transform_2(%arg0: i32) -> (i32, i32) {
    %c0_i32 = arith.constant 0 : i32
    %c0_i32_0 = arith.constant 0 : i32
    return %arg0, %c0_i32 : i32, i32
  }
}

</mosaic_0001>

<bundles_post_ra>
// kernel: tpu_custom_call.1
= control target key start
LH: loop header
LB: loop body
LE: loop exit
PB: predicated region body
PF: predicated region fallthrough
CT: control target
= control target key end

     0   :  { %7 = vsyncpa [#allocation3], 0  ;;  %s228_s0 = inlined_call_operand.hbm [shape: f32[8,32], index: 0, kind: input, shape index: {}]   ;;  %s229_s1 = inlined_call_operand.hbm [shape: f32[8,32], index: 1, kind: input, shape index: {}]   ;;  %s230_s2 = inlined_call_operand.hbm [shape: f32[1,128], index: 2, kind: output, shape index: {}]  }
   0x1   :  { %8 = vsyncpa [#allocation6], 0 }
   0x2   :  { %9 = vsyncpa [#allocation4], 0  ;;  %s15_s11 = sshll.u32 %s228_s0, 4  ;;  %s198_s12 = smov [#allocation2]   ;;  %s16_s11 = int_to_ptr.hbm [resolvable:$true] %s15_s11 }
   0x3   :  { %s17_s13 = sshll.u32 %s198_s12, 4  ;;  %s26_s16 = sshll.u32 %s229_s1, 4  ;;  %s18_s13 = int_to_ptr.vmem [resolvable:$true] %s17_s13  ;;  %s27_s16 = int_to_ptr.hbm [resolvable:$true] %s26_s16 }
   0x4   :  { %20 = dma.hbm_to_vmem [thread:$0]  %s16_s11, 128, %s18_s13, [#allocation3]  }
   0x5   :  { %s199_s17 = smov [#allocation5]  }
   0x6   :  { %s28_s18 = sshll.u32 %s199_s17, 4  ;;  %s29_s18 = int_to_ptr.vmem [resolvable:$true] %s28_s18 }
   0x7   :  { %31 = dma.hbm_to_vmem [thread:$0]  %s27_s16, 128, %s29_s18, [#allocation6]  }
   0x8   :  { %192 = dma.done.wait [#allocation3], 128  }
   0x9   :  { %193 = vsyncadd [#allocation3], 4294967168 }
   0xa   :  { %194 = dma.done.wait [#allocation6], 128  }
   0xb   :  { %195 = vsyncadd [#allocation6], 4294967168  ;;  %vm42_vm0 = vcmask 261120   ;;  %v40_v0 = vld [vmem:[#allocation2] sm:$0xff]  ;;  %v41_v23 = vld [vmem:[#allocation5] sm:$0xff]  ;;  %vm78_vm5 = vcmask 7168  }
   0xc   :  { %v43_v1 = vsel %vm42_vm0, %v40_v0, -inf  ;;  %s200_s0 = smov [#allocation7]   ;;  %s98_s21 = sshll.u32 %s230_s2, 4  ;;  %s99_s21 = int_to_ptr.hbm [resolvable:$true] %s98_s21 }
   0xd   :  { %44 = vmax.xlane.f32.xlu0 %v43_v1  ;;  %s96_s1 = sshll.u32 %s200_s0, 4  ;;  %s97_s1 = int_to_ptr.vmem [resolvable:$true] %s96_s1 }
  0x80   :  { %v45_v2 = vpop.xlane.xlu0 %44 }
  0x81   :  { %v46_v3 = vsub.f32 %v40_v0, %v45_v2 }
  0x83   :  { %v47_v4 = vmul.f32 1.442695, %v46_v3 }
  0x85   :  { %114 = vpow2.f32 %v47_v4 }
  0x8b   :  { %v115_v5 = vpop.eup %114 }
  0x8c   :  { %v49_v6 = vsel %vm42_vm0, %v115_v5, 0.0 }
  0x8d   :  { %50 = vadd.xlane.f32.xlu0 %v49_v6 }
 0x100   :  { %v51_v7 = vpop.xlane.xlu0 %50 }
 0x101   :  { %116 = vrcp.f32 %v51_v7  ;;  %v63_v11 = vand.u32 2147483648, %v51_v7  ;;  %v61_v13 = vand.u32 2147483647, %v51_v7  ;;  %vm57_vm2 = vweird.f32 %v51_v7 }
 0x103   :  { %v64_v15 = vor.u32 1.1754944e-38, %v63_v11  ;;  %vm62_vm4 = vcmp.eq.f32.partialorder %v61_v13, 8.507059e+37 }
 0x107   :  { %v117_v8 = vpop.eup %116 }
 0x108   :  { %v53_v9 = vmul.f32 %v117_v8, %v51_v7  ;;  %vm58_vm1 = vweird.f32 %v117_v8 }
 0x109   :  { %vm59_vm3 = vmor %vm57_vm2, %vm58_vm1 }
 0x10a   :  { %v54_v10 = vsub.f32 1.0, %v53_v9 }
 0x10c   :  { %v55_v12 = vmul.f32 %v117_v8, %v54_v10 }
 0x10e   :  { %v56_v14 = vadd.f32 %v117_v8, %v55_v12 }
 0x110   :  { %v60_v16 = vsel %vm59_vm3, %v117_v8, %v56_v14 }
 0x111   :  { %v65_v17 = vsel %vm62_vm4, %v64_v15, %v60_v16 }
 0x112   :  { %v66_v18 = vmul.f32 %v115_v5, %v65_v17 }
 0x114   :  { %v67_v19 = vadd.f32 1e-07, %v66_v18  ;;  %v72_v22 = vsub.f32 1.0, %v66_v18 }
 0x116   :  { %118 = vlog2.f32 %v67_v19  ;;  %v73_v26 = vmul.f32 %v72_v22, %v72_v22 }
 0x11c   :  { %v119_v20 = vpop.eup %118 }
 0x11d   :  { %v69_v21 = vmul.f32 0.6931472, %v119_v20 }
 0x11f   :  { %v70_v24 = vsub.f32 0.0, %v69_v21 }
 0x121   :  { %v71_v25 = vmul.f32 %v70_v24, %v41_v23 }
 0x123   :  { %v74_v27 = vmul.f32 %v73_v26, %v71_v25 }
 0x125   :  { %v75_v28 = vsel %vm42_vm0, %v74_v27, 0.0 }
 0x126   :  { %76 = vadd.xlane.f32.xlu1 %v75_v28 }
 0x199   :  { %v77_v29 = vpop.xlane.xlu1 %76 }
 0x19a   :  { %v79_v30 = vsel %vm78_vm5, %v77_v29, 0.0 }
 0x19b   :  { %80 = vadd.xlane.f32.xlu1 %v79_v30 }
 0x20e   :  { %v81_v31 = vpop.xlane.xlu1 %80 }
 0x20f   :  { %v82_v32 = vrot.slane %v81_v31, 4 }
 0x211   :  { %v83_v33 = vadd.f32 %v82_v32, %v81_v31 }
 0x213   :  { %v84_v34 = vrot.slane %v83_v33, 2 }
 0x215   :  { %v85_v35 = vadd.f32 %v84_v34, %v83_v33 }
 0x217   :  { %v86_v36 = vrot.slane %v85_v35, 1 }
 0x219   :  { %v87_v37 = vadd.f32 %v86_v36, %v85_v35 }
 0x21b   :  { %109 = vpush %v87_v37 }
 0x24c   :  { %s110_s22 = spop %109 }
 0x24d   :  { %v89_v38 = vstv %s110_s22 }
 0x24e   :  { %90 = vst [vmem:[#allocation7] sm:$0x1] %v89_v38 }
 0x24f   :  { %101 = dma.vmem_to_hbm [thread:$0]  %s97_s1, 16, %s99_s21, [#allocation4]  }
 0x250   :  { %196 = dma.done.wait [#allocation4], 16  }
 0x251   :  { %197 = vsyncadd [#allocation4], 4294967280 }
 0x252   :  { %106 = vsyncpa [#allocation3], 1 }
 0x253   :  { %107 = vsyncpa [#allocation6], 1 }
 0x254   :  { %108 = vsyncpa [#allocation4], 1 }

</bundles_post_ra>
